<compile_context>
chip_gen: v7x
topology: tpu7x:2x2x1
jax: 0.10.0
libtpu: 0.0.40
codegen_flags: <defaults>
</compile_context>

<pallas_src>
import jax
import jax.numpy as jnp
from jax.experimental import pallas as pl
from jax.experimental.pallas import tpu as pltpu

LANE = 128
SUBLANE = 8


def _round_up(x: int, m: int) -> int:
    return (x + m - 1) // m * m


def clas_encoder_kernel(obs_ref, act_ref,
                        w1o_ref, w1a_ref, b1_ref,
                        w2_ref, b2_ref,
                        w3_ref, b3_ref,
                        wh_ref, bh_ref,
                        out_ref):
    """Fused MLP trunk (3x Linear+ReLU) + fused mu|logvar head on one batch tile.

    Inputs/weights are bf16 on the MXU; accumulation, bias add and ReLU are f32.
    """
    # Layer 1: torch.cat folded into two dots against the split W1.
    h = (jnp.dot(obs_ref[...], w1o_ref[...], preferred_element_type=jnp.float32)
         + jnp.dot(act_ref[...], w1a_ref[...], preferred_element_type=jnp.float32)
         + b1_ref[...])
    h = jnp.maximum(h, 0.0)

    # Layer 2.
    h = jnp.dot(h.astype(jnp.bfloat16), w2_ref[...],
                preferred_element_type=jnp.float32) + b2_ref[...]
    h = jnp.maximum(h, 0.0)

    # Layer 3.
    h = jnp.dot(h.astype(jnp.bfloat16), w3_ref[...],
                preferred_element_type=jnp.float32) + b3_ref[...]
    h = jnp.maximum(h, 0.0)

    # Fused mu|logvar head, lane-dense (128-padded) slab, bf16 writeback.
    out_ref[...] = (jnp.dot(h.astype(jnp.bfloat16), wh_ref[...],
                            preferred_element_type=jnp.float32)
                    + bh_ref[...]).astype(out_ref.dtype)


def init_clas_encoder_params(obs_dim: int, action_dim: int, latent_dim: int,
                             hidden_dim: int = 256, seed: int = 0):
    """nn.Linear-style init; weights stored [in, out] in f32 (reference layout)."""
    input_dim = obs_dim + action_dim
    key = jax.random.PRNGKey(seed)
    keys = jax.random.split(key, 10)

    def linear(kw, kb, fan_in, fan_out):
        bound = 1.0 / jnp.sqrt(jnp.float32(fan_in))
        w = jax.random.uniform(kw, (fan_in, fan_out), jnp.float32, -bound, bound)
        b = jax.random.uniform(kb, (1, fan_out), jnp.float32, -bound, bound)
        return w, b

    w1, b1 = linear(keys[0], keys[1], input_dim, hidden_dim)
    w2, b2 = linear(keys[2], keys[3], hidden_dim, hidden_dim)
    w3, b3 = linear(keys[4], keys[5], hidden_dim, hidden_dim)
    wmu, bmu = linear(keys[6], keys[7], hidden_dim, latent_dim)
    wlv, blv = linear(keys[8], keys[9], hidden_dim, latent_dim)
    return (w1, b1, w2, b2, w3, b3, wmu, bmu, wlv, blv)


def prepare_kernel_params(raw_params, obs_dim: int):
    """Split W1 at obs_dim, fuse + lane-pad the two heads, pre-cast all weights to bf16."""
    w1, b1, w2, b2, w3, b3, wmu, bmu, wlv, blv = raw_params
    hidden_dim = w2.shape[0]
    latent_dim = wmu.shape[1]
    head_pad = _round_up(2 * latent_dim, LANE)

    # W1 split, pre-cast to bf16 (no per-tile VPU cast, half the DMA bytes).
    w1o = w1[:obs_dim].astype(jnp.bfloat16)
    w1a = w1[obs_dim:].astype(jnp.bfloat16)

    # Fused, lane-padded head weight/bias (padded columns are zero -> sliced off).
    wh = jnp.zeros((hidden_dim, head_pad), jnp.bfloat16)
    wh = wh.at[:, :latent_dim].set(wmu.astype(jnp.bfloat16))
    wh = wh.at[:, latent_dim:2 * latent_dim].set(wlv.astype(jnp.bfloat16))
    bh = jnp.zeros((1, head_pad), jnp.float32)
    bh = bh.at[:, :latent_dim].set(bmu)
    bh = bh.at[:, latent_dim:2 * latent_dim].set(blv)

    kernel_params = (w1o, w1a, b1,
                     w2.astype(jnp.bfloat16), b2,
                     w3.astype(jnp.bfloat16), b3,
                     wh, bh)
    return kernel_params, latent_dim, head_pad


def _pick_batch_tile(batch: int, tm: int | None) -> int:
    """Large tiles amortize per-grid-step overhead; keep >=2 tiles for v7x's 2 TCs."""
    if tm is None:
        tm = 2048                       # sweep 1024-2048 at production batch
    if SUBLANE < batch <= tm:
        # Split into (at least) two tiles so both v7x TensorCores get work.
        half = pl.cdiv(batch, 2)
        align = 256 if half >= 512 else SUBLANE
        tm = _round_up(half, align)
    tm = max(SUBLANE, min(tm, _round_up(batch, SUBLANE)))
    return _round_up(tm, SUBLANE)


def clas_encoder_forward(obs, actions, kernel_params, latent_dim, head_pad,
                         *, tm=None):
    """Runs the fused Pallas kernel; returns (mu, logvar) as bf16."""
    batch, obs_dim = obs.shape
    act_dim = actions.shape[1]
    w1o, w1a, b1, w2, b2, w3, b3, wh, bh = kernel_params
    hidden_dim = w2.shape[0]

    # Cast activations to bf16 once (skip if the producer already gives bf16).
    if obs.dtype != jnp.bfloat16:
        obs = obs.astype(jnp.bfloat16)
    if actions.dtype != jnp.bfloat16:
        actions = actions.astype(jnp.bfloat16)

    tm = _pick_batch_tile(batch, tm)
    num_tiles = pl.cdiv(batch, tm)          # ragged last tile handled by Pallas

    def batch_spec(feat):
        return pl.BlockSpec((tm, feat), lambda i: (i, 0))

    def const_spec(a):
        # Constant index map -> fetched once; single-buffer to save VMEM.
        idx = lambda i: (0,) * a.ndim
        try:
            return pl.BlockSpec(a.shape, idx, pipeline_mode=pl.Buffered(1))
        except TypeError:  # older BlockSpec signature without pipeline_mode
            return pl.BlockSpec(a.shape, idx)

    # Explicit VMEM budget: double-buffered activation/output tiles,
    # single-buffered params, a few live (tm, hidden) f32 intermediates.
    tile_in_bytes = tm * (obs_dim + act_dim) * 2          # bf16
    tile_out_bytes = tm * head_pad * 2                    # bf16
    param_bytes = sum(int(p.size) * p.dtype.itemsize for p in kernel_params)
    interm_bytes = 4 * tm * hidden_dim * 4                # f32 intermediates headroom
    vmem_need = 2 * (tile_in_bytes + tile_out_bytes) + param_bytes \
        + interm_bytes + (2 << 20)
    # Floor above v5e's 16 MiB scoped default; cap below v7x's 64 MiB physical.
    vmem_limit = int(min(max(vmem_need, 20 << 20), 48 << 20))

    rows = num_tiles * tm
    flops = 2 * rows * ((obs_dim + act_dim) * hidden_dim
                        + 2 * hidden_dim * hidden_dim
                        + hidden_dim * head_pad)
    bytes_accessed = (rows * (obs_dim + act_dim) * 2
                      + param_bytes
                      + rows * head_pad * 2)

    out = pl.pallas_call(
        clas_encoder_kernel,
        out_shape=jax.ShapeDtypeStruct((batch, head_pad), jnp.bfloat16),
        grid=(num_tiles,),
        in_specs=[batch_spec(obs_dim), batch_spec(act_dim),
                  const_spec(w1o), const_spec(w1a), const_spec(b1),
                  const_spec(w2), const_spec(b2),
                  const_spec(w3), const_spec(b3),
                  const_spec(wh), const_spec(bh)],
        out_specs=pl.BlockSpec((tm, head_pad), lambda i: (i, 0)),
        compiler_params=pltpu.CompilerParams(
            dimension_semantics=("parallel",),
            vmem_limit_bytes=vmem_limit),
        cost_estimate=pl.CostEstimate(flops=flops, transcendentals=0,
                                      bytes_accessed=bytes_accessed),
    )(obs, actions, w1o, w1a, b1, w2, b2, w3, b3, wh, bh)

    mu = out[:, :latent_dim]
    logvar = out[:, latent_dim:2 * latent_dim]
    return mu, logvar


def _reference_forward(obs, actions, raw_params):
    """Pure-JAX reference mirroring the kernel's bf16-in / f32-accumulate math."""
    w1, b1, w2, b2, w3, b3, wmu, bmu, wlv, blv = raw_params

    def dot_bf16(x, w):
        return jnp.dot(x.astype(jnp.bfloat16), w.astype(jnp.bfloat16),
                       preferred_element_type=jnp.float32)

    x = jnp.concatenate([obs, actions], axis=-1).astype(jnp.float32)
    h = jnp.maximum(dot_bf16(x, w1) + b1, 0.0)
    h = jnp.maximum(dot_bf16(h, w2) + b2, 0.0)
    h = jnp.maximum(dot_bf16(h, w3) + b3, 0.0)
    return dot_bf16(h, wmu) + bmu, dot_bf16(h, wlv) + blv


if __name__ == "__main__":
    # Small shapes consistent with the module: obs_dim=12, action_dim=4,
    # latent_dim=8, hidden_dim=32, batch=8.
    obs_dim, action_dim, latent_dim, hidden_dim = 12, 4, 8, 32
    batch = 8

    key = jax.random.PRNGKey(0)
    k_obs, k_act = jax.random.split(key)
    obs = jax.random.normal(k_obs, (batch, obs_dim), jnp.float32)
    actions = jax.random.normal(k_act, (batch, action_dim), jnp.float32)

    raw_params = init_clas_encoder_params(obs_dim, action_dim, latent_dim, hidden_dim)
    kernel_params, latent_dim_, head_pad = prepare_kernel_params(raw_params, obs_dim)

    mu, logvar = clas_encoder_forward(obs, actions, kernel_params,
                                      latent_dim_, head_pad)
    jax.block_until_ready((mu, logvar))

    mu_ref, logvar_ref = _reference_forward(obs, actions, raw_params)
    assert mu.shape == (batch, latent_dim) and logvar.shape == (batch, latent_dim)
    # Kernel output is bf16 (intentional, per perf review); compare in f32 with a
    # tolerance that covers the final bf16 rounding of an f32 accumulator.
    assert jnp.allclose(mu.astype(jnp.float32), mu_ref, atol=1e-2, rtol=1e-2)
    assert jnp.allclose(logvar.astype(jnp.float32), logvar_ref, atol=1e-2, rtol=1e-2)

    print("KERNEL_OK")
</pallas_src>

<mosaic_0001>
module attributes {stable_mosaic.version = 11 : i64} {
  func.func @clas_encoder_kernel(%arg0: i32, %arg1: memref<8x12xbf16, #tpu.memory_space<vmem>>, %arg2: memref<8x4xbf16, #tpu.memory_space<vmem>>, %arg3: memref<12x32xbf16, #tpu.memory_space<vmem>>, %arg4: memref<4x32xbf16, #tpu.memory_space<vmem>>, %arg5: memref<1x32xf32, #tpu.memory_space<vmem>>, %arg6: memref<32x32xbf16, #tpu.memory_space<vmem>>, %arg7: memref<1x32xf32, #tpu.memory_space<vmem>>, %arg8: memref<32x32xbf16, #tpu.memory_space<vmem>>, %arg9: memref<1x32xf32, #tpu.memory_space<vmem>>, %arg10: memref<32x128xbf16, #tpu.memory_space<vmem>>, %arg11: memref<1x128xf32, #tpu.memory_space<vmem>>, %arg12: memref<8x128xbf16, #tpu.memory_space<vmem>>) attributes {dimension_semantics = [#tpu.dimension_semantics<parallel>], iteration_bounds = array<i64: 1>, scalar_prefetch = 0 : i64, scratch_operands = 0 : i64, tpu.core_type = #tpu.core_type<tc>, window_params = [{transform_indices = @transform_0, window_bounds = array<i64: 8, 12>}, {transform_indices = @transform_1, window_bounds = array<i64: 8, 4>}, {pipeline_mode = #tpu.pipeline_mode<synchronous>, transform_indices = @transform_2, window_bounds = array<i64: 12, 32>}, {pipeline_mode = #tpu.pipeline_mode<synchronous>, transform_indices = @transform_3, window_bounds = array<i64: 4, 32>}, {pipeline_mode = #tpu.pipeline_mode<synchronous>, transform_indices = @transform_4, window_bounds = array<i64: 1, 32>}, {pipeline_mode = #tpu.pipeline_mode<synchronous>, transform_indices = @transform_5, window_bounds = array<i64: 32, 32>}, {pipeline_mode = #tpu.pipeline_mode<synchronous>, transform_indices = @transform_6, window_bounds = array<i64: 1, 32>}, {pipeline_mode = #tpu.pipeline_mode<synchronous>, transform_indices = @transform_7, window_bounds = array<i64: 32, 32>}, {pipeline_mode = #tpu.pipeline_mode<synchronous>, transform_indices = @transform_8, window_bounds = array<i64: 1, 32>}, {pipeline_mode = #tpu.pipeline_mode<synchronous>, transform_indices = @transform_9, window_bounds = array<i64: 32, 128>}, {pipeline_mode = #tpu.pipeline_mode<synchronous>, transform_indices = @transform_10, window_bounds = array<i64: 1, 128>}, {transform_indices = @transform_11, window_bounds = array<i64: 8, 128>}]} {
    %c0 = arith.constant 0 : index
    %c0_0 = arith.constant 0 : index
    %0 = vector.load %arg1[%c0, %c0_0] : memref<8x12xbf16, #tpu.memory_space<vmem>>, vector<8x12xbf16>
    %c0_1 = arith.constant 0 : index
    %c0_2 = arith.constant 0 : index
    %1 = vector.load %arg3[%c0_1, %c0_2] : memref<12x32xbf16, #tpu.memory_space<vmem>>, vector<12x32xbf16>
    %cst = arith.constant dense<0.000000e+00> : vector<8x32xf32>
    %2 = tpu.matmul %0, %1, %cst {dimension_numbers = #tpu.dot_dimension_numbers<[1], [0], [0], [1], [0, 0, 1, 1], [], []>} : vector<8x12xbf16>, vector<12x32xbf16>, vector<8x32xf32> -> vector<8x32xf32>
    %c0_3 = arith.constant 0 : index
    %c0_4 = arith.constant 0 : index
    %3 = vector.load %arg2[%c0_3, %c0_4] : memref<8x4xbf16, #tpu.memory_space<vmem>>, vector<8x4xbf16>
    %c0_5 = arith.constant 0 : index
    %c0_6 = arith.constant 0 : index
    %4 = vector.load %arg4[%c0_5, %c0_6] : memref<4x32xbf16, #tpu.memory_space<vmem>>, vector<4x32xbf16>
    %cst_7 = arith.constant dense<0.000000e+00> : vector<8x32xf32>
    %5 = tpu.matmul %3, %4, %cst_7 {dimension_numbers = #tpu.dot_dimension_numbers<[1], [0], [0], [1], [0, 0, 1, 1], [], []>} : vector<8x4xbf16>, vector<4x32xbf16>, vector<8x32xf32> -> vector<8x32xf32>
    %6 = arith.addf %2, %5 : vector<8x32xf32>
    %c0_8 = arith.constant 0 : index
    %c0_9 = arith.constant 0 : index
    %7 = vector.load %arg5[%c0_8, %c0_9] : memref<1x32xf32, #tpu.memory_space<vmem>>, vector<1x32xf32>
    %8 = vector.broadcast %7 : vector<1x32xf32> to vector<8x32xf32>
    %9 = arith.addf %6, %8 : vector<8x32xf32>
    %cst_10 = arith.constant 0.000000e+00 : f32
    %10 = vector.broadcast %cst_10 : f32 to vector<8x32xf32>
    %11 = arith.maximumf %9, %10 : vector<8x32xf32>
    %12 = arith.truncf %11 : vector<8x32xf32> to vector<8x32xbf16>
    %c0_11 = arith.constant 0 : index
    %c0_12 = arith.constant 0 : index
    %13 = vector.load %arg6[%c0_11, %c0_12] : memref<32x32xbf16, #tpu.memory_space<vmem>>, vector<32x32xbf16>
    %cst_13 = arith.constant dense<0.000000e+00> : vector<8x32xf32>
    %14 = tpu.matmul %12, %13, %cst_13 {dimension_numbers = #tpu.dot_dimension_numbers<[1], [0], [0], [1], [0, 0, 1, 1], [], []>} : vector<8x32xbf16>, vector<32x32xbf16>, vector<8x32xf32> -> vector<8x32xf32>
    %c0_14 = arith.constant 0 : index
    %c0_15 = arith.constant 0 : index
    %15 = vector.load %arg7[%c0_14, %c0_15] : memref<1x32xf32, #tpu.memory_space<vmem>>, vector<1x32xf32>
    %16 = vector.broadcast %15 : vector<1x32xf32> to vector<8x32xf32>
    %17 = arith.addf %14, %16 : vector<8x32xf32>
    %cst_16 = arith.constant 0.000000e+00 : f32
    %18 = vector.broadcast %cst_16 : f32 to vector<8x32xf32>
    %19 = arith.maximumf %17, %18 : vector<8x32xf32>
    %20 = arith.truncf %19 : vector<8x32xf32> to vector<8x32xbf16>
    %c0_17 = arith.constant 0 : index
    %c0_18 = arith.constant 0 : index
    %21 = vector.load %arg8[%c0_17, %c0_18] : memref<32x32xbf16, #tpu.memory_space<vmem>>, vector<32x32xbf16>
    %cst_19 = arith.constant dense<0.000000e+00> : vector<8x32xf32>
    %22 = tpu.matmul %20, %21, %cst_19 {dimension_numbers = #tpu.dot_dimension_numbers<[1], [0], [0], [1], [0, 0, 1, 1], [], []>} : vector<8x32xbf16>, vector<32x32xbf16>, vector<8x32xf32> -> vector<8x32xf32>
    %c0_20 = arith.constant 0 : index
    %c0_21 = arith.constant 0 : index
    %23 = vector.load %arg9[%c0_20, %c0_21] : memref<1x32xf32, #tpu.memory_space<vmem>>, vector<1x32xf32>
    %24 = vector.broadcast %23 : vector<1x32xf32> to vector<8x32xf32>
    %25 = arith.addf %22, %24 : vector<8x32xf32>
    %cst_22 = arith.constant 0.000000e+00 : f32
    %26 = vector.broadcast %cst_22 : f32 to vector<8x32xf32>
    %27 = arith.maximumf %25, %26 : vector<8x32xf32>
    %28 = arith.truncf %27 : vector<8x32xf32> to vector<8x32xbf16>
    %c0_23 = arith.constant 0 : index
    %c0_24 = arith.constant 0 : index
    %29 = vector.load %arg10[%c0_23, %c0_24] : memref<32x128xbf16, #tpu.memory_space<vmem>>, vector<32x128xbf16>
    %cst_25 = arith.constant dense<0.000000e+00> : vector<8x128xf32>
    %30 = tpu.matmul %28, %29, %cst_25 {dimension_numbers = #tpu.dot_dimension_numbers<[1], [0], [0], [1], [0, 0, 1, 1], [], []>} : vector<8x32xbf16>, vector<32x128xbf16>, vector<8x128xf32> -> vector<8x128xf32>
    %c0_26 = arith.constant 0 : index
    %c0_27 = arith.constant 0 : index
    %31 = vector.load %arg11[%c0_26, %c0_27] : memref<1x128xf32, #tpu.memory_space<vmem>>, vector<1x128xf32>
    %32 = vector.broadcast %31 : vector<1x128xf32> to vector<8x128xf32>
    %33 = arith.addf %30, %32 : vector<8x128xf32>
    %34 = arith.truncf %33 : vector<8x128xf32> to vector<8x128xbf16>
    %c0_28 = arith.constant 0 : index
    %c0_29 = arith.constant 0 : index
    %35 = vector.load %arg12[%c0_28, %c0_29] : memref<8x128xbf16, #tpu.memory_space<vmem>>, vector<8x128xbf16>
    tpu.vector_store %arg12[%c0_28, %c0_29], %34 {strides = array<i32>} : memref<8x128xbf16, #tpu.memory_space<vmem>>, vector<8x128xbf16>,
    return
  }
  func.func @transform_0(%arg0: i32) -> (i32, i32) {
    %c0_i32 = arith.constant 0 : i32
    %c0_i32_0 = arith.constant 0 : i32
    return %arg0, %c0_i32 : i32, i32
  }
  func.func @transform_1(%arg0: i32) -> (i32, i32) {
    %c0_i32 = arith.constant 0 : i32
    %c0_i32_0 = arith.constant 0 : i32
    return %arg0, %c0_i32 : i32, i32
  }
  func.func @transform_2(%arg0: i32) -> (i32, i32) {
    %c0_i32 = arith.constant 0 : i32
    %c0_i32_0 = arith.constant 0 : i32
    %c0_i32_1 = arith.constant 0 : i32
    return %c0_i32, %c0_i32_0 : i32, i32
  }
  func.func @transform_3(%arg0: i32) -> (i32, i32) {
    %c0_i32 = arith.constant 0 : i32
    %c0_i32_0 = arith.constant 0 : i32
    %c0_i32_1 = arith.constant 0 : i32
    return %c0_i32, %c0_i32_0 : i32, i32
  }
  func.func @transform_4(%arg0: i32) -> (i32, i32) {
    %c0_i32 = arith.constant 0 : i32
    %c0_i32_0 = arith.constant 0 : i32
    %c0_i32_1 = arith.constant 0 : i32
    return %c0_i32, %c0_i32_0 : i32, i32
  }
  func.func @transform_5(%arg0: i32) -> (i32, i32) {
    %c0_i32 = arith.constant 0 : i32
    %c0_i32_0 = arith.constant 0 : i32
    %c0_i32_1 = arith.constant 0 : i32
    return %c0_i32, %c0_i32_0 : i32, i32
  }
  func.func @transform_6(%arg0: i32) -> (i32, i32) {
    %c0_i32 = arith.constant 0 : i32
    %c0_i32_0 = arith.constant 0 : i32
    %c0_i32_1 = arith.constant 0 : i32
    return %c0_i32, %c0_i32_0 : i32, i32
  }
  func.func @transform_7(%arg0: i32) -> (i32, i32) {
    %c0_i32 = arith.constant 0 : i32
    %c0_i32_0 = arith.constant 0 : i32
    %c0_i32_1 = arith.constant 0 : i32
    return %c0_i32, %c0_i32_0 : i32, i32
  }
  func.func @transform_8(%arg0: i32) -> (i32, i32) {
    %c0_i32 = arith.constant 0 : i32
    %c0_i32_0 = arith.constant 0 : i32
    %c0_i32_1 = arith.constant 0 : i32
    return %c0_i32, %c0_i32_0 : i32, i32
  }
  func.func @transform_9(%arg0: i32) -> (i32, i32) {
    %c0_i32 = arith.constant 0 : i32
    %c0_i32_0 = arith.constant 0 : i32
    %c0_i32_1 = arith.constant 0 : i32
    return %c0_i32, %c0_i32_0 : i32, i32
  }
  func.func @transform_10(%arg0: i32) -> (i32, i32) {
    %c0_i32 = arith.constant 0 : i32
    %c0_i32_0 = arith.constant 0 : i32
    %c0_i32_1 = arith.constant 0 : i32
    return %c0_i32, %c0_i32_0 : i32, i32
  }
  func.func @transform_11(%arg0: i32) -> (i32, i32) {
    %c0_i32 = arith.constant 0 : i32
    %c0_i32_0 = arith.constant 0 : i32
    return %arg0, %c0_i32 : i32, i32
  }
}

</mosaic_0001>

<bundles_post_ra>
// kernel: tpu_custom_call.1
= control target key start
LH: loop header
LB: loop body
LE: loop exit
PB: predicated region body
PF: predicated region fallthrough
CT: control target
= control target key end

     0   :  { %16 = vsyncpa [#allocation3], 0  ;;  %s890_s0 = inlined_call_operand.hbm [shape: bf16[8,12], index: 0, kind: input, shape index: {}]   ;;  %s891_s1 = inlined_call_operand.vmem [shape: bf16[8,4], index: 1, kind: input, shape index: {}]   ;;  %s892_s2 = inlined_call_operand.hbm [shape: bf16[12,32], index: 2, kind: input, shape index: {}]   ;;  %s893_s3 = inlined_call_operand.hbm [shape: bf16[4,32], index: 3, kind: input, shape index: {}]   ;;  %s894_s4 = inlined_call_operand.hbm [shape: f32[1,32], index: 4, kind: input, shape index: {}]   ;;  %s895_s5 = inlined_call_operand.vmem [shape: bf16[32,32], index: 5, kind: input, shape index: {}]   ;;  %s896_s6 = inlined_call_operand.hbm [shape: f32[1,32], index: 6, kind: input, shape index: {}]   ;;  %s897_s7 = inlined_call_operand.vmem [shape: bf16[32,32], index: 7, kind: input, shape index: {}]   ;;  %s898_s8 = inlined_call_operand.vmem [shape: f32[1,32], index: 8, kind: input, shape index: {}]   ;;  %s899_s9 = inlined_call_operand.hbm [shape: bf16[32,128], index: 9, kind: input, shape index: {}]   ;;  %s900_s10 = inlined_call_operand.vmem [shape: f32[1,128], index: 10, kind: input, shape index: {}]   ;;  %s901_s11 = inlined_call_operand.hbm [shape: bf16[8,128], index: 11, kind: output, shape index: {}]  }
   0x1   :  { %17 = vsyncpa [#allocation6], 0 }
   0x2   :  { %18 = vsyncpa [#allocation9], 0 }
   0x3   :  { %19 = vsyncpa [#allocation12], 0 }
   0x4   :  { %20 = vsyncpa [#allocation4], 0  ;;  %s700_s17 = smov [#allocation5]   ;;  %s536_s21 = scalar_lea.hbm %s892_s2, 128 }
   0x5   :  { %s38_s18 = sshll.u32 %s700_s17, 4  ;;  %p537_p0 = scmp.ne.s32.totalorder %s892_s2, %s536_s21  ;;  %s39_s18 = int_to_ptr.vmem [resolvable:$true] %s38_s18 }
   0x6   :  { %p540_p1 = scmp.lt.u32.totalorder %s536_s21, %s892_s2 }
   0x8   :  { %p542_p2 = pnand %p540_p1, %p537_p0 }
   0xa   :  { %545 = shalt.err (!%p542_p2)
}
   0xb   :  { %s546_s26 = scalar_lea.vmem %s39_s18, 128  ;;  %p551_p4 = scmp.lt.s32.totalorder %s39_s18, %s39_s18 }
   0xc   :  { %p547_p3 = scmp.ne.s32.totalorder %s39_s18, %s546_s26  ;;  %p552_p5 = scmp.lt.s32.totalorder %s546_s26, %s546_s26 }
   0xe   :  { %p553_p6 = por %p552_p5, %p551_p4 }
  0x10   :  { %p554_p7 = pnand %p553_p6, %p547_p3 }
  0x12   :  { %557 = shalt.err (!%p554_p7)
}
  0x13   :  { %s701_s27 = smov 64   ;;  %s702_s28 = smov 4  }
  0x14   :  { %44 = dma.hbm_to_vmem [thread:$0]  %s892_s2, 128, %s39_s18, [#allocation6], %s701_s27, %s701_s27, %s702_s28  }
  0x15   :  { %s703_s12 = smov [#allocation8]   ;;  %s704_s14 = smov [#allocation2]  }
  0x16   :  { %s61_s13 = sshll.u32 %s703_s12, 4  ;;  %s27_s15 = sshll.u32 %s704_s14, 4  ;;  %s62_s13 = int_to_ptr.vmem [resolvable:$true] %s61_s13  ;;  %s28_s15 = int_to_ptr.vmem [resolvable:$true] %s27_s15 }
  0x17   :  { %s558_s19 = scalar_lea.hbm %s894_s4, 16 }
  0x18   :  { %p559_p8 = scmp.ne.s32.totalorder %s894_s4, %s558_s19  ;;  %p562_p9 = scmp.lt.u32.totalorder %s558_s19, %s894_s4 }
  0x1a   :  { %p564_p10 = pnand %p562_p9, %p559_p8 }
  0x1c   :  { %567 = shalt.err (!%p564_p10)
}
  0x1d   :  { %s568_s2 = scalar_lea.vmem %s62_s13, 16  ;;  %s572_s18 = scalar_lea.vmem %s62_s13, 32 }
  0x1e   :  { %p569_p11 = scmp.ne.s32.totalorder %s62_s13, %s568_s2  ;;  %p573_p12 = scmp.lt.s32.totalorder %s62_s13, %s62_s13 }
  0x1f   :  { %p574_p13 = scmp.lt.s32.totalorder %s572_s18, %s568_s2 }
  0x21   :  { %p575_p0 = por %p574_p13, %p573_p12 }
  0x23   :  { %p576_p1 = pnand %p575_p0, %p569_p11 }
  0x25   :  { %579 = shalt.err (!%p576_p1)
}
  0x26   :  { %64 = dma.hbm_to_vmem [thread:$0]  %s894_s4, 16, %s62_s13, [#allocation9]  }
  0x27   :  { %s580_s30 = scalar_lea.hbm %s890_s0, 64 }
  0x28   :  { %p581_p2 = scmp.ne.s32.totalorder %s890_s0, %s580_s30  ;;  %p584_p3 = scmp.lt.u32.totalorder %s580_s30, %s890_s0 }
  0x2a   :  { %p586_p4 = pnand %p584_p3, %p581_p2 }
  0x2c   :  { %589 = shalt.err (!%p586_p4)
}
  0x2d   :  { %s590_s19 = scalar_lea.vmem %s28_s15, 64  ;;  %p595_p6 = scmp.lt.s32.totalorder %s28_s15, %s28_s15 }
  0x2e   :  { %p591_p5 = scmp.ne.s32.totalorder %s28_s15, %s590_s19  ;;  %p596_p7 = scmp.lt.s32.totalorder %s590_s19, %s590_s19 }
  0x30   :  { %p597_p8 = por %p596_p7, %p595_p6 }
  0x32   :  { %p598_p9 = pnand %p597_p8, %p591_p5 }
  0x34   :  { %601 = shalt.err (!%p598_p9)
}
  0x35   :  { %30 = dma.hbm_to_vmem [thread:$0]  %s890_s0, 64, %s28_s15, [#allocation3]  }
  0x36   :  { %s705_s20 = smov [#allocation7]   ;;  %s706_s22 = smov [#allocation10]  }
  0x37   :  { %s51_s21 = sshll.u32 %s705_s20, 4  ;;  %s73_s23 = sshll.u32 %s706_s22, 4  ;;  %s52_s21 = int_to_ptr.vmem [resolvable:$true] %s51_s21  ;;  %s74_s23 = int_to_ptr.vmem [resolvable:$true] %s73_s23 }
  0x38   :  { %s602_s24 = scalar_lea.hbm %s893_s3, 32 }
  0x39   :  { %p603_p10 = scmp.ne.s32.totalorder %s893_s3, %s602_s24  ;;  %p606_p11 = scmp.lt.u32.totalorder %s602_s24, %s893_s3 }
  0x3b   :  { %p608_p12 = pnand %p606_p11, %p603_p10 }
  0x3d   :  { %611 = shalt.err (!%p608_p12)
}
  0x3e   :  { %s612_s0 = scalar_lea.vmem %s52_s21, 32  ;;  %p617_p0 = scmp.lt.s32.totalorder %s52_s21, %s52_s21 }
  0x3f   :  { %p613_p13 = scmp.ne.s32.totalorder %s52_s21, %s612_s0  ;;  %p618_p1 = scmp.lt.s32.totalorder %s612_s0, %s612_s0 }
  0x41   :  { %p619_p2 = por %p618_p1, %p617_p0 }
  0x43   :  { %p620_p3 = pnand %p619_p2, %p613_p13 }
  0x45   :  { %623 = shalt.err (!%p620_p3)
}
  0x46   :  { %54 = dma.hbm_to_vmem [thread:$0]  %s893_s3, 32, %s52_s21, [#allocation6]  }
  0x47   :  { %s624_s17 = scalar_lea.hbm %s896_s6, 16 }
  0x48   :  { %p625_p4 = scmp.ne.s32.totalorder %s896_s6, %s624_s17  ;;  %p628_p5 = scmp.lt.u32.totalorder %s624_s17, %s896_s6 }
  0x4a   :  { %p630_p6 = pnand %p628_p5, %p625_p4 }
  0x4c   :  { %633 = shalt.err (!%p630_p6)
}
  0x4d   :  { %s634_s22 = scalar_lea.vmem %s74_s23, 16  ;;  %s638_s2 = scalar_lea.vmem %s74_s23, 32 }
  0x4e   :  { %p635_p7 = scmp.ne.s32.totalorder %s74_s23, %s634_s22  ;;  %p639_p8 = scmp.lt.s32.totalorder %s74_s23, %s74_s23 }
  0x4f   :  { %p640_p9 = scmp.lt.s32.totalorder %s638_s2, %s634_s22 }
  0x51   :  { %p641_p10 = por %p640_p9, %p639_p8 }
  0x53   :  { %p642_p11 = pnand %p641_p10, %p635_p7 }
  0x55   :  { %645 = shalt.err (!%p642_p11)
}
  0x56   :  { %76 = dma.hbm_to_vmem [thread:$0]  %s896_s6, 16, %s74_s23, [#allocation9]  }
  0x57   :  { %s707_s18 = smov [#allocation11]   ;;  %s646_s29 = scalar_lea.hbm %s899_s9, 256 }
  0x58   :  { %s86_s24 = sshll.u32 %s707_s18, 4  ;;  %p647_p12 = scmp.ne.s32.totalorder %s899_s9, %s646_s29  ;;  %s87_s24 = int_to_ptr.vmem [resolvable:$true] %s86_s24 }
  0x59   :  { %p650_p13 = scmp.lt.u32.totalorder %s646_s29, %s899_s9 }
  0x5b   :  { %p652_p0 = pnand %p650_p13, %p647_p12 }
  0x5d   :  { %655 = shalt.err (!%p652_p0)
}
  0x5e   :  { %s656_s14 = scalar_lea.vmem %s87_s24, 256  ;;  %p661_p2 = scmp.lt.s32.totalorder %s87_s24, %s87_s24 }
  0x5f   :  { %p657_p1 = scmp.ne.s32.totalorder %s87_s24, %s656_s14  ;;  %p662_p3 = scmp.lt.s32.totalorder %s656_s14, %s656_s14 }
  0x61   :  { %p663_p4 = por %p662_p3, %p661_p2 }
  0x63   :  { %p664_p5 = pnand %p663_p4, %p657_p1 }
  0x65   :  { %667 = shalt.err (!%p664_p5)
}
  0x66   :  { %92 = dma.hbm_to_vmem [thread:$0]  %s899_s9, 256, %s87_s24, [#allocation12], %s701_s27, %s701_s27, %s702_s28  }
  0x67   :  { %690 = dma.done.wait [#allocation3], 64  }
  0x68   :  { %691 = vsyncadd [#allocation3], 4294967232 }
  0x69   :  { %692 = dma.done.wait [#allocation6], 160  }
  0x6a   :  { %693 = vsyncadd [#allocation6], 4294967136 }
  0x6b   :  { %694 = dma.done.wait [#allocation9], 32  }
  0x6c   :  { %695 = vsyncadd [#allocation9], 4294967264 }
  0x6d   :  { %696 = dma.done.wait [#allocation12], 256  }
  0x6e   :  { %697 = vsyncadd [#allocation12], 4294967040  ;;  %v708_v0 = vmov 0.0   ;;  %vm709_vm0 = vmmov 0   ;;  %vm123_vm1 = vcmask 1041408   ;;  %vm176_vm2 = vcmask 1045504  }
  0x6f   :  { %482 = vmatprep.subr.bf16.mxu0 %v708_v0  ;;  %488 = vmatprep.subr.bf16.mxu1 %v708_v0  ;;  %v118_v1 = vld [vmem:[#allocation7] sm:$0x3]  ;;  %v529_v3 = vld [vmem:[#allocation5] sm:$0x3f]   ;;  %v117_v4 = vld [vmem:[%s891_s1] sm:$0xf] }
  0x70   :  { %484 = vmatprep.mubr.msk.bf16.mxu0 %vm709_vm0, %v708_v0  ;;  %490 = vmatprep.mubr.msk.bf16.mxu1 %vm709_vm0, %v708_v0  ;;  %v125_v2 = vsel %vm123_vm1, %v118_v1, 0  ;;  %vm119_vm3 = vcmask 31744   ;;  %v114_v5 = vld [vmem:[#allocation2] sm:$0xf]  ;;  %v178_v6 = vsel %vm176_vm2, %v529_v3, 0  ;;  %vm172_vm4 = vcmask 97280  }
  0x71   :  { %483 = vmatpush3.bf16.msra.mxu0 %v125_v2  ;;  %489 = vmatpush3.bf16.msra.mxu1 %v178_v6  ;;  %v530_v7 = vld [vmem:[%s895_s5] sm:$0xff]   ;;  %v531_v8 = vld [vmem:[%s895_s5 + $0x8] sm:$0xff]   ;;  %vm253_vm5 = vcmask 261120   ;;  %v534_v24 = vld [vmem:[#allocation11] sm:$0xff]   ;;  %s710_s3 = smov [#allocation13]  }
  0x72   :  { %494 = vmatprep.subr.bf16.mxu0 %v708_v0  ;;  %502 = vmatprep.subr.bf16.mxu1 %v708_v0  ;;  %v532_v9 = vld [vmem:[%s897_s7] sm:$0xff]   ;;  %v456_v14 = vld [vmem:[#allocation8] ss:$0 sm:$0xff]  ;;  %v457_v25 = vld [vmem:[#allocation10] ss:$0 sm:$0xff]  ;;  %s441_s21 = sshll.u32 %s710_s3, 4  ;;  %s442_s21 = int_to_ptr.vmem [resolvable:$true] %s441_s21 }
  0x73   :  { %v533_v23 = vld [vmem:[%s897_s7 + $0x8] sm:$0xff]   ;;  %v535_v33 = vld [vmem:[#allocation11 + $0x8] sm:$0xff]   ;;  %p673_p7 = scmp.lt.s32.totalorder %s442_s21, %s442_s21 }
  0x74   :  { %485 = vmatmul.mubr.msk.bf16.vlgmr.msra.gmra.mrb[0].mxu0 %vm119_vm3, %v117_v4  ;;  %491 = vmatmul.mubr.msk.bf16.vlgmr.msra.gmra.mrb[0].mxu1 %vm172_vm4, %v114_v5  ;;  %v461_v34 = vld [vmem:[%s898_s8] ss:$0 sm:$0xff]  ;;  %s668_s8 = scalar_lea.vmem %s442_s21, 64 }
  0x75   :  { %498 = vmatprep.mubr.msk.bf16.mxu0 %vm709_vm0, %v708_v0  ;;  %506 = vmatprep.mubr.msk.bf16.mxu1 %vm709_vm0, %v708_v0  ;;  %v465_v42 = vld [vmem:[%s900_s10] ss:$0 sm:$0xff]  ;;  %p669_p6 = scmp.ne.s32.totalorder %s442_s21, %s668_s8  ;;  %p674_p8 = scmp.lt.s32.totalorder %s668_s8, %s668_s8 }
  0x76   :  { %495 = vmatpush3.bf16.msra.mxu0 %v530_v7  ;;  %503 = vmatpush3.bf16.msra.mxu1 %v532_v9 }
  0x77   :  { %496 = vmatprep.subr.bf16.mxu0 %v708_v0  ;;  %504 = vmatprep.subr.bf16.mxu1 %v708_v0  ;;  %p675_p9 = por %p674_p8, %p673_p7 }
  0x79   :  { %p676_p10 = pnand %p675_p9, %p669_p6 }
  0x7a   :  { %497 = vmatpush3.bf16.msra.mxu0 %v531_v8  ;;  %505 = vmatpush3.bf16.msra.mxu1 %v533_v23 }
  0x7b   :  { %510 = vmatprep.subr.bf16.mxu0 %v708_v0 }
 0x147   :  { %v161_v10 = vpop.f32.mrb[0].mxu0  ;;  %v214_v13 = vpop.f32.mrb[0].mxu1 }
 0x148   :  { %v486_v11 = vpop.f32.mrb[1].mxu0  ;;  %v215_v15 = vadd.f32 %v214_v13, %v161_v10  ;;  %v492_v17 = vpop.f32.mrb[1].mxu1 }
 0x149   :  { %v164_v12 = vpop.f32.mrb[2].mxu0  ;;  %v217_v18 = vpop.f32.mrb[2].mxu1 }
 0x14a   :  { %v487_v16 = vpop.f32.mrb[3].mxu0  ;;  %v227_v19 = vadd.f32 %v456_v14, %v215_v15  ;;  %v493_v20 = vpop.f32.mrb[3].mxu1 }
 0x14c   :  { %v228_v21 = vmax.f32 %v227_v19, 0.0 }
 0x14e   :  { %v229_v22 = vpack.c.bf16 %v228_v21, %v228_v21 }
 0x150   :  { %499 = vmatmul.mubr.msk.bf16.vlgmr.msra.gmra.mrb[4].mxu0 %vm253_vm5, %v229_v22 }
 0x151   :  { %514 = vmatprep.mubr.msk.bf16.mxu0 %vm709_vm0, %v708_v0  ;;  %511 = vmatpush3.bf16.msra.mxu0 %v534_v24 }
 0x152   :  { %512 = vmatprep.subr.bf16.mxu0 %v708_v0 }
 0x155   :  { %513 = vmatpush3.bf16.msra.mxu0 %v535_v33 }
 0x223   :  { %v291_v26 = vpop.f32.mrb[4].mxu0 }
 0x224   :  { %v292_v27 = vadd.f32 %v457_v25, %v291_v26  ;;  %v500_v28 = vpop.f32.mrb[5].mxu0 }
 0x225   :  { %v294_v29 = vpop.f32.mrb[6].mxu0 }
 0x226   :  { %v297_v30 = vmax.f32 %v292_v27, 0.0  ;;  %v501_v31 = vpop.f32.mrb[7].mxu0 }
 0x228   :  { %v298_v32 = vpack.c.bf16 %v297_v30, %v297_v30 }
 0x22a   :  { %507 = vmatmul.mubr.msk.bf16.vlgmr.msra.gmra.mrb[4].mxu1 %vm253_vm5, %v298_v32 }
 0x2fd   :  { %v359_v35 = vpop.f32.mrb[4].mxu1 }
 0x2fe   :  { %v360_v36 = vadd.f32 %v461_v34, %v359_v35  ;;  %v508_v37 = vpop.f32.mrb[5].mxu1 }
 0x2ff   :  { %v362_v38 = vpop.f32.mrb[6].mxu1 }
 0x300   :  { %v365_v39 = vmax.f32 %v360_v36, 0.0  ;;  %v509_v40 = vpop.f32.mrb[7].mxu1 }
 0x302   :  { %v366_v41 = vpack.c.bf16 %v365_v39, %v365_v39 }
 0x304   :  { %515 = vmatmul.mubr.msk.bf16.vlgmr.msra.gmra.mrb[8].mxu0 %vm253_vm5, %v366_v41 }
 0x3d7   :  { %v427_v43 = vpop.f32.mrb[8].mxu0 }
 0x3d8   :  { %v428_v44 = vadd.f32 %v465_v42, %v427_v43  ;;  %v516_v45 = vpop.f32.mrb[9].mxu0 }
 0x3d9   :  { %v430_v46 = vpop.f32.mrb[10].mxu0 }
 0x3da   :  { %v433_v47 = vpack.c.bf16 %v428_v44, %v428_v44  ;;  %v517_v48 = vpop.f32.mrb[11].mxu0 }
 0x3dc   :  { %434 = vst [vmem:[#allocation13] sm:$0xf] %v433_v47 }
 0x3dd   :  { %679 = shalt.err (!%p676_p10)
}
 0x3de   :  { %s680_s10 = scalar_lea.hbm %s901_s11, 64 }
 0x3df   :  { %p681_p11 = scmp.ne.s32.totalorder %s901_s11, %s680_s10  ;;  %p684_p12 = scmp.lt.u32.totalorder %s680_s10, %s901_s11 }
 0x3e1   :  { %p686_p13 = pnand %p684_p12, %p681_p11 }
 0x3e3   :  { %689 = shalt.err (!%p686_p13)
}
 0x3e4   :  { %444 = dma.vmem_to_hbm [thread:$0]  %s442_s21, 64, %s901_s11, [#allocation4]  }
 0x3e5   :  { %698 = dma.done.wait [#allocation4], 64  }
 0x3e6   :  { %699 = vsyncadd [#allocation4], 4294967232 }
 0x3e7   :  { %448 = vsyncpa [#allocation3], 1 }
 0x3e8   :  { %449 = vsyncpa [#allocation6], 1 }
 0x3e9   :  { %450 = vsyncpa [#allocation9], 1 }
 0x3ea   :  { %451 = vsyncpa [#allocation12], 1 }
 0x3eb   :  { %452 = vsyncpa [#allocation4], 1 }

</bundles_post_ra>
